<compile_context>
chip_gen: v5e
topology: v5e:2x2
jax: 0.10.0
libtpu: 0.0.40
codegen_flags: <defaults>
</compile_context>

<pallas_src>
import functools

import jax
import jax.numpy as jnp
from jax.experimental import pallas as pl
from jax.experimental.pallas import tpu as pltpu


# ----------------------------------------------------------------------------
# Kernels
# ----------------------------------------------------------------------------

def _ca_single_pass_kernel(x_ref, w1_ref, w2_ref, o_ref, *, inv_l):
    """Grid = (B_tiles,).  One step: pool -> MLP -> gate for b_tile rows.

    x_ref  : (b_tile, C, L)   several whole batch rows
    w1_ref : (H, C)           PyTorch nn.Linear weight layout (out, in)
    w2_ref : (C, H)
    o_ref  : (b_tile, C, L)
    """
    x = x_ref[...]                                                  # (BT,C,L)
    # Per-row, per-channel mean over L (lane-axis reduce; hidden under DMA).
    pooled = jnp.sum(x.astype(jnp.float32), axis=-1) * inv_l        # (BT, C)
    # Linear(C->H) == pooled @ W1^T, expressed as a contraction over the
    # shared C axis so the PyTorch (out, in) layout needs no transpose.
    h = jax.lax.dot_general(
        pooled, w1_ref[...].astype(jnp.float32),
        dimension_numbers=(((1,), (1,)), ((), ())),
        preferred_element_type=jnp.float32)                         # (BT, H)
    h = jnp.maximum(h, 0.0)
    y = jax.lax.dot_general(
        h, w2_ref[...].astype(jnp.float32),
        dimension_numbers=(((1,), (1,)), ((), ())),
        preferred_element_type=jnp.float32)                         # (BT, C)
    y = jax.nn.sigmoid(y).astype(x.dtype)                           # gate
    o_ref[...] = (x * y[:, :, None]).astype(o_ref.dtype)


def _ca_streamed_kernel(x_ref, w1_ref, w2_ref, o_ref, sum_ref, y_ref,
                        *, l_total, l_tile):
    """Grid = (B, 2, L_tiles).  Phase 0 sums over L, phase 1 MLP + gate.

    x_ref  : (C, l_tile)   tile of one batch row (batch dim squeezed)
    w1_ref : (H, C)        w2_ref : (C, H)
    o_ref  : (C, l_tile)
    sum_ref, y_ref : (C, 1) f32 VMEM scratch, persistent across grid steps
    """
    phase = pl.program_id(1)
    lt = pl.program_id(2)

    # ---------------- phase 0: accumulate per-channel sum over L ----------
    @pl.when(jnp.logical_and(phase == 0, lt == 0))
    def _init():
        sum_ref[...] = jnp.zeros_like(sum_ref)

    @pl.when(phase == 0)
    def _accumulate():
        x = x_ref[...].astype(jnp.float32)                 # load inside branch
        if l_total % l_tile != 0:
            # Ragged edge tile: mask lanes past the true length so stale VMEM
            # padding never enters the mean.
            col = lt * l_tile + jax.lax.broadcasted_iota(
                jnp.int32, x.shape, dimension=1)
            x = jnp.where(col < l_total, x, 0.0)
        sum_ref[...] += jnp.sum(x, axis=-1, keepdims=True)

    # ---------------- phase 1: MLP once per row, gate every L tile --------
    @pl.when(jnp.logical_and(phase == 1, lt == 0))
    def _mlp():
        pooled = sum_ref[...] * (1.0 / l_total)            # (C, 1)
        w1 = w1_ref[...].astype(jnp.float32)
        w2 = w2_ref[...].astype(jnp.float32)
        h = jnp.maximum(
            jnp.dot(w1, pooled, preferred_element_type=jnp.float32), 0.0)
        y_ref[...] = jax.nn.sigmoid(
            jnp.dot(w2, h, preferred_element_type=jnp.float32))     # (C, 1)

    @pl.when(phase == 1)
    def _gate():
        x = x_ref[...]
        # Cast the gate to the activation dtype before the broadcast multiply
        # (bf16-native VALU on v6e/v7x, no-op for f32).
        o_ref[...] = (x * y_ref[...].astype(x.dtype)).astype(o_ref.dtype)


# ----------------------------------------------------------------------------
# Wrapper
# ----------------------------------------------------------------------------

def _vmem_budget():
    """Per-generation scoped-VMEM limit and per-buffer tile target (bytes)."""
    phys = None
    try:
        phys = int(getattr(pltpu.get_tpu_info(), "vmem_capacity_bytes"))
    except Exception:
        phys = None
    if phys is None:
        limit = 48 * 1024 * 1024          # safe everywhere (v7x has 64 MiB)
    else:
        limit = min(64 * 1024 * 1024, (phys * 3) // 4)
    # 2 input + 2 output double buffers + weights + compiler headroom.
    tile_target = max(1 << 20, min(8 << 20, limit // 12))
    return limit, tile_target


def _choose_l_tile(c, l, itemsize, target_tile_bytes):
    """Pick an L tile: whole L if small, else a lane-dense (x128) tile."""
    if c * l * itemsize <= target_tile_bytes:
        return l
    max_t = max(128, ((target_tile_bytes // (c * itemsize)) // 128) * 128)
    if max_t >= l:
        return l
    t = max_t
    while t >= 128:                       # prefer an exact divisor (no ragged)
        if l % t == 0:
            return t
        t -= 128
    return max_t                          # ragged last tile, masked in-kernel


def channel_attention(x, w1, w2, *, single_pass_max_bytes=None,
                      tile_target_bytes=None):
    """x: (B, C, L); w1: (C//ratio, C); w2: (C, C//ratio).  Returns x * gate."""
    B, C, L = x.shape
    H = w1.shape[0]
    assert w1.shape == (H, C) and w2.shape == (C, H)

    itemsize = jnp.dtype(x.dtype).itemsize
    vmem_limit, tile_target = _vmem_budget()
    if tile_target_bytes is not None:
        tile_target = int(tile_target_bytes)
    if single_pass_max_bytes is None:
        single_pass_max_bytes = tile_target

    w_bytes = (w1.size * jnp.dtype(w1.dtype).itemsize
               + w2.size * jnp.dtype(w2.dtype).itemsize)
    row_bytes = C * L * itemsize

    # ---------------- fast path: whole rows per grid step ------------------
    if row_bytes <= single_pass_max_bytes:
        b_tile = int(max(1, min(B, tile_target // max(row_bytes, 1))))
        grid = (pl.cdiv(B, b_tile),)
        kernel = functools.partial(_ca_single_pass_kernel,
                                   inv_l=1.0 / float(L))
        cost = pl.CostEstimate(
            flops=2 * B * C * L + 4 * B * C * H,        # pool + gate + MLP
            transcendentals=B * C,                      # sigmoid
            bytes_accessed=2 * B * C * L * itemsize + w_bytes,
        )
        return pl.pallas_call(
            kernel,
            out_shape=jax.ShapeDtypeStruct((B, C, L), x.dtype),
            grid=grid,
            in_specs=[
                pl.BlockSpec((b_tile, C, L), lambda i: (i, 0, 0)),
                pl.BlockSpec((H, C), lambda i: (0, 0)),   # weights VMEM-resident
                pl.BlockSpec((C, H), lambda i: (0, 0)),
            ],
            out_specs=pl.BlockSpec((b_tile, C, L), lambda i: (i, 0, 0)),
            compiler_params=pltpu.CompilerParams(
                dimension_semantics=("parallel",),
                vmem_limit_bytes=vmem_limit,
            ),
            cost_estimate=cost,
        )(x, w1, w2)

    # ---------------- streamed two-phase path for large rows ---------------
    l_tile = _choose_l_tile(C, L, itemsize, tile_target)
    n_lt = pl.cdiv(L, l_tile)
    kernel = functools.partial(_ca_streamed_kernel, l_total=L, l_tile=l_tile)
    cost = pl.CostEstimate(
        flops=2 * B * C * L + 4 * B * C * H,
        transcendentals=B * C,
        bytes_accessed=3 * B * C * L * itemsize + w_bytes,   # x read 2x, write 1x
    )
    # TODO(synk): for B == 1 on v7x, split the L-tile axis across the two
    # TensorCores (per-core partial sums combined via CMEM) so the second
    # core is not idle; the "parallel" batch axis only engages at B >= 2.
    return pl.pallas_call(
        kernel,
        out_shape=jax.ShapeDtypeStruct((B, C, L), x.dtype),
        grid=(B, 2, n_lt),
        in_specs=[
            pl.BlockSpec((None, C, l_tile), lambda b, p, l: (b, 0, l)),
            pl.BlockSpec((H, C), lambda b, p, l: (0, 0)),
            pl.BlockSpec((C, H), lambda b, p, l: (0, 0)),
        ],
        # Output block index frozen at (b, 0, 0) through phase 0 (never
        # written there, so never flushed) and advances only during phase 1
        # after each tile is fully written -> every output block is DMA'd to
        # HBM exactly once with valid data.
        out_specs=pl.BlockSpec((None, C, l_tile), lambda b, p, l: (b, 0, l * p)),
        scratch_shapes=[
            pltpu.VMEM((C, 1), jnp.float32),   # running per-channel sum
            pltpu.VMEM((C, 1), jnp.float32),   # gate y = sigmoid(MLP(mean))
        ],
        compiler_params=pltpu.CompilerParams(
            dimension_semantics=("parallel", "arbitrary", "arbitrary"),
            vmem_limit_bytes=vmem_limit,
        ),
        cost_estimate=cost,
    )(x, w1, w2)


# ----------------------------------------------------------------------------
# Self-test
# ----------------------------------------------------------------------------

def _reference(x, w1, w2):
    pooled = jnp.mean(x, axis=-1)
    y = jax.nn.sigmoid(jnp.maximum(pooled @ w1.T, 0.0) @ w2.T)
    return x * y[:, :, None]


if __name__ == "__main__":
    key = jax.random.PRNGKey(0)
    kx, k1, k2, kx2, k3, k4 = jax.random.split(key, 6)
    ratio = 8

    # ---- primary case (fast path): small NeRF ChannelAttention shapes -----
    B, C, L = 2, 32, 16
    H = C // ratio
    x = jax.random.normal(kx, (B, C, L), dtype=jnp.float32)
    # PyTorch nn.Linear weight shapes: (out_features, in_features), bias=False.
    w1 = jax.random.normal(k1, (H, C), dtype=jnp.float32) * 0.1
    w2 = jax.random.normal(k2, (C, H), dtype=jnp.float32) * 0.1

    out = channel_attention(x, w1, w2)
    jax.block_until_ready(out)
    ref = _reference(x, w1, w2)
    assert jnp.allclose(out, ref, atol=1e-5, rtol=1e-5), "single-pass mismatch"

    # ---- streamed path (forced tiny tiles; exercises phases + masked edge) -
    B2, C2, L2 = 2, 16, 576            # 576 = 4*128 + 64 -> ragged masked tile
    H2 = C2 // ratio
    x2 = jax.random.normal(kx2, (B2, C2, L2), dtype=jnp.float32)
    w1b = jax.random.normal(k3, (H2, C2), dtype=jnp.float32) * 0.1
    w2b = jax.random.normal(k4, (C2, H2), dtype=jnp.float32) * 0.1

    out2 = channel_attention(x2, w1b, w2b,
                             single_pass_max_bytes=1024,
                             tile_target_bytes=C2 * 128 * 4)
    jax.block_until_ready(out2)
    ref2 = _reference(x2, w1b, w2b)
    assert jnp.allclose(out2, ref2, atol=1e-5, rtol=1e-5), "streamed mismatch"

    print("KERNEL_OK")
</pallas_src>

<mosaic_0001>
module attributes {stable_mosaic.version = 11 : i64} {
  func.func @_ca_single_pass_kernel(%arg0: i32, %arg1: memref<2x32x16xf32, #tpu.memory_space<vmem>>, %arg2: memref<4x32xf32, #tpu.memory_space<vmem>>, %arg3: memref<32x4xf32, #tpu.memory_space<vmem>>, %arg4: memref<2x32x16xf32, #tpu.memory_space<vmem>>) attributes {dimension_semantics = [#tpu.dimension_semantics<parallel>], iteration_bounds = array<i64: 1>, scalar_prefetch = 0 : i64, scratch_operands = 0 : i64, tpu.core_type = #tpu.core_type<tc>, window_params = [{transform_indices = @transform_0, window_bounds = array<i64: 2, 32, 16>}, {pipeline_mode = #tpu.pipeline_mode<synchronous>, transform_indices = @transform_1, window_bounds = array<i64: 4, 32>}, {pipeline_mode = #tpu.pipeline_mode<synchronous>, transform_indices = @transform_2, window_bounds = array<i64: 32, 4>}, {transform_indices = @transform_3, window_bounds = array<i64: 2, 32, 16>}]} {
    %c0 = arith.constant 0 : index
    %c0_0 = arith.constant 0 : index
    %c0_1 = arith.constant 0 : index
    %0 = vector.load %arg1[%c0, %c0_0, %c0_1] : memref<2x32x16xf32, #tpu.memory_space<vmem>>, vector<2x32x16xf32>
    %cst = arith.constant dense<0.000000e+00> : vector<2x32xf32>
    %1 = vector.multi_reduction <add>, %0, %cst [2] : vector<2x32x16xf32> to vector<2x32xf32>
    %cst_2 = arith.constant 6.250000e-02 : f32
    %2 = vector.broadcast %cst_2 : f32 to vector<2x32xf32>
    %3 = arith.mulf %1, %2 : vector<2x32xf32>
    %c0_3 = arith.constant 0 : index
    %c0_4 = arith.constant 0 : index
    %4 = vector.load %arg2[%c0_3, %c0_4] : memref<4x32xf32, #tpu.memory_space<vmem>>, vector<4x32xf32>
    %cst_5 = arith.constant dense<0.000000e+00> : vector<2x4xf32>
    %5 = tpu.matmul %3, %4, %cst_5 {dimension_numbers = #tpu.dot_dimension_numbers<[1], [1], [0], [0], [0, 0, 1, 0], [], []>} : vector<2x32xf32>, vector<4x32xf32>, vector<2x4xf32> -> vector<2x4xf32>
    %cst_6 = arith.constant 0.000000e+00 : f32
    %6 = vector.broadcast %cst_6 : f32 to vector<2x4xf32>
    %7 = arith.maximumf %5, %6 : vector<2x4xf32>
    %c0_7 = arith.constant 0 : index
    %c0_8 = arith.constant 0 : index
    %8 = vector.load %arg3[%c0_7, %c0_8] : memref<32x4xf32, #tpu.memory_space<vmem>>, vector<32x4xf32>
    %cst_9 = arith.constant dense<0.000000e+00> : vector<2x32xf32>
    %9 = tpu.matmul %7, %8, %cst_9 {dimension_numbers = #tpu.dot_dimension_numbers<[1], [1], [0], [0], [0, 0, 1, 0], [], []>} : vector<2x4xf32>, vector<32x4xf32>, vector<2x32xf32> -> vector<2x32xf32>
    %10 = arith.negf %9 : vector<2x32xf32>
    %11 = math.exp %10 : vector<2x32xf32>
    %cst_10 = arith.constant 1.000000e+00 : f32
    %12 = vector.broadcast %cst_10 : f32 to vector<2x32xf32>
    %13 = arith.addf %12, %11 : vector<2x32xf32>
    %14 = arith.divf %12, %13 : vector<2x32xf32>
    %15 = vector.shape_cast %14 : vector<2x32xf32> to vector<2x32x1xf32>
    %16 = vector.broadcast %15 : vector<2x32x1xf32> to vector<2x32x16xf32>
    %17 = arith.mulf %0, %16 : vector<2x32x16xf32>
    %c0_11 = arith.constant 0 : index
    %c0_12 = arith.constant 0 : index
    %c0_13 = arith.constant 0 : index
    %18 = vector.load %arg4[%c0_11, %c0_12, %c0_13] : memref<2x32x16xf32, #tpu.memory_space<vmem>>, vector<2x32x16xf32>
    tpu.vector_store %arg4[%c0_11, %c0_12, %c0_13], %17 {strides = array<i32>} : memref<2x32x16xf32, #tpu.memory_space<vmem>>, vector<2x32x16xf32>,
    return
  }
  func.func @transform_0(%arg0: i32) -> (i32, i32, i32) {
    %c0_i32 = arith.constant 0 : i32
    %c0_i32_0 = arith.constant 0 : i32
    %c0_i32_1 = arith.constant 0 : i32
    return %arg0, %c0_i32, %c0_i32_0 : i32, i32, i32
  }
  func.func @transform_1(%arg0: i32) -> (i32, i32) {
    %c0_i32 = arith.constant 0 : i32
    %c0_i32_0 = arith.constant 0 : i32
    %c0_i32_1 = arith.constant 0 : i32
    return %c0_i32, %c0_i32_0 : i32, i32
  }
  func.func @transform_2(%arg0: i32) -> (i32, i32) {
    %c0_i32 = arith.constant 0 : i32
    %c0_i32_0 = arith.constant 0 : i32
    %c0_i32_1 = arith.constant 0 : i32
    return %c0_i32, %c0_i32_0 : i32, i32
  }
  func.func @transform_3(%arg0: i32) -> (i32, i32, i32) {
    %c0_i32 = arith.constant 0 : i32
    %c0_i32_0 = arith.constant 0 : i32
    %c0_i32_1 = arith.constant 0 : i32
    return %arg0, %c0_i32, %c0_i32_0 : i32, i32, i32
  }
}

</mosaic_0001>

<bundles_post_ra>
// kernel: tpu_custom_call.1
= control target key start
LH: loop header
LB: loop body
LE: loop exit
PB: predicated region body
PF: predicated region fallthrough
CT: control target
= control target key end

     0   :  { %vm22_vm0 = vcmask 130048   ;;  %vm88_vm1 = vcmask 261120   ;;  %vm119_vm2 = vcmask 31744   ;;  %v64_v23 = vlaneseq  ;;  %s403_s0 = inlined_call_operand.vmem [shape: f32[2,32,16], index: 0, kind: input, shape index: {}]   ;;  %s404_s1 = inlined_call_operand.vmem [shape: f32[4,32], index: 1, kind: input, shape index: {}]   ;;  %s405_s2 = inlined_call_operand.vmem [shape: f32[32,4], index: 2, kind: input, shape index: {}]   ;;  %s406_s3 = inlined_call_operand.vmem [shape: f32[2,32,16], index: 3, kind: output, shape index: {}]  }
   0x1   :  { %v288_v0 = vld [vmem:[%s403_s0 + $0x20] sm:$0xff]  ;;  %v298_v2 = vld [vmem:[%s403_s0 + $0x10] sm:$0xff]  ;;  %v309_v6 = vld [vmem:[%s403_s0 + $0x28] sm:$0xff]  ;;  %vm69_vm3 = vcmask 130112   ;;  %vm73_vm4 = vcmask 195712   ;;  %vm77_vm5 = vcmask 261312  }
   0x2   :  { %v293_v1 = vld [vmem:[%s403_s0] sm:$0xff]  ;;  %v35_v3 = vsel %vm22_vm0, %v288_v0, 0.0  ;;  %v29_v5 = vsel %vm22_vm0, %v298_v2, 0.0  ;;  %v314_v7 = vld [vmem:[%s403_s0 + $0x8] sm:$0xff]  ;;  %v319_v8 = vld [vmem:[%s403_s0 + $0x30] sm:$0xff]  ;;  %v38_v9 = vsel %vm22_vm0, %v309_v6, 0.0 }
   0x3   :  { %v23_v4 = vsel %vm22_vm0, %v293_v1, 0.0  ;;  %36 = vadd.xlane.f32.xlu1 %v35_v3  ;;  %30 = vadd.xlane.f32.xlu2 %v29_v5  ;;  %v26_v10 = vsel %vm22_vm0, %v314_v7, 0.0  ;;  %v41_v11 = vsel %vm22_vm0, %v319_v8, 0.0  ;;  %v330_v12 = vld [vmem:[%s403_s0 + $0x38] sm:$0xff]  ;;  %v55_v16 = vld [vmem:[%s404_s1] sm:$0xf] }
   0x4   :  { %24 = vadd.xlane.f32.xlu0 %v23_v4  ;;  %v335_v13 = vld [vmem:[%s403_s0 + $0x18] sm:$0xff]  ;;  %v44_v14 = vsel %vm22_vm0, %v330_v12, 0.0  ;;  %244 = vmatpush.xpose.msk.msra.mxu0 %vm88_vm1, %v55_v16  ;;  %v117_v18 = vld [vmem:[%s405_s2 + $0x10] sm:$0xff]  ;;  %v116_v19 = vld [vmem:[%s405_s2 + $0x8] sm:$0xff]  ;;  %v65_v24 = vand.u32 127, %v64_v23  ;;  %vm86_vm6 = vcmask 1041409  }
   0x5   :  { %v32_v15 = vsel %vm22_vm0, %v335_v13, 0.0  ;;  %v118_v17 = vld [vmem:[%s405_s2 + $0x18] sm:$0xff]  ;;  %v115_v56 = vld [vmem:[%s405_s2] sm:$0xff]  ;;  %v176_v59 = vshrl.u32 %v64_v23, 7 }
   0x6   :  { %246 = vmatpush.xpose.msk.msra.mxu1 %vm119_vm2, %v118_v17  ;;  %v67_v27 = vadd.s32 4294967288, %v65_v24  ;;  %v71_v36 = vadd.s32 4294967280, %v65_v24  ;;  %v75_v40 = vadd.s32 4294967272, %v65_v24 }
   0x7   :  { %252 = vset.pattern.permute.xlu2 %v176_v59  ;;  %v189_v60 = vadd.s32 16, %v176_v59  ;;  %v183_v61 = vadd.s32 8, %v176_v59 }
   0x9   :  { %254 = vset.pattern.permute.xlu1 %v189_v60  ;;  %253 = vset.pattern.permute.xlu0 %v183_v61 }
   0xa   :  { %247 = vmatpush.xpose.msk.msra.mxu1 %vm119_vm2, %v117_v18 }
   0xb   :  { %39 = vadd.xlane.f32.xlu1 %v38_v9  ;;  %42 = vadd.xlane.f32.xlu2 %v41_v11 }
   0xc   :  { %27 = vadd.xlane.f32.xlu0 %v26_v10 }
   0xe   :  { %248 = vmatpush.xpose.msk.msra.mxu1 %vm119_vm2, %v116_v19 }
  0x12   :  { %249 = vmatpush.xpose.msk.msra.mxu1 %vm119_vm2, %v115_v56 }
  0x13   :  { %45 = vadd.xlane.f32.xlu1 %v44_v14 }
  0x14   :  { %33 = vadd.xlane.f32.xlu0 %v32_v15 }
  0x76   :  { %v37_v20 = vpop.xlane.xlu1 %36  ;;  %v31_v22 = vpop.xlane.xlu2 %30 }
  0x77   :  { %v25_v21 = vpop.xlane.xlu0 %24  ;;  %v51_v31 = vmul.f32 0.0625, %v37_v20  ;;  %v49_v37 = vmul.f32 0.0625, %v31_v22 }
  0x78   :  { %v47_v32 = vmul.f32 0.0625, %v25_v21  ;;  %v195_v21 = vadd.s32 24, %v176_v59 }
  0x79   :  { %v79_v38 = vperm.slane %v51_v31, %v65_v24  ;;  %v72_v48 = vperm.slane %v49_v37, %v71_v36 }
  0x7a   :  { %v66_v39 = vperm.slane %v47_v32, %v65_v24 }
  0x7e   :  { %v40_v25 = vpop.xlane.xlu1 %39  ;;  %v43_v30 = vpop.xlane.xlu2 %42 }
  0x7f   :  { %v28_v26 = vpop.xlane.xlu0 %27  ;;  %v52_v28 = vmul.f32 0.0625, %v40_v25  ;;  %v53_v33 = vmul.f32 0.0625, %v43_v30 }
  0x80   :  { %v48_v29 = vmul.f32 0.0625, %v28_v26 }
  0x81   :  { %v80_v34 = vperm.slane %v52_v28, %v67_v27  ;;  %v82_v41 = vperm.slane %v53_v33, %v71_v36 }
  0x82   :  { %v68_v35 = vperm.slane %v48_v29, %v67_v27 }
  0x83   :  { %v81_v44 = vsel %vm69_vm3, %v80_v34, %v79_v38 }
  0x84   :  { %v70_v45 = vsel %vm69_vm3, %v68_v35, %v66_v39  ;;  %v83_v52 = vsel %vm73_vm4, %v82_v41, %v81_v44 }
  0x85   :  { %v74_v51 = vsel %vm73_vm4, %v72_v48, %v70_v45 }
  0x86   :  { %v46_v42 = vpop.xlane.xlu1 %45 }
  0x87   :  { %v34_v43 = vpop.xlane.xlu0 %33  ;;  %v54_v46 = vmul.f32 0.0625, %v46_v42 }
  0x88   :  { %v50_v47 = vmul.f32 0.0625, %v34_v43 }
  0x89   :  { %v84_v49 = vperm.slane %v54_v46, %v75_v40 }
  0x8a   :  { %v76_v50 = vperm.slane %v50_v47, %v75_v40 }
  0x8b   :  { %v85_v54 = vsel %vm77_vm5, %v84_v49, %v83_v52 }
  0x8c   :  { %v78_v53 = vsel %vm77_vm5, %v76_v50, %v74_v51 }
  0x8d   :  { %v87_v55 = vsel %vm86_vm6, %v85_v54, %v78_v53 }
  0x8e   :  { %245 = vmatmul.msk.f32.vlgmr.msra.gmra.mxu0 %vm88_vm1, %v87_v55 }
 0x10b   :  { %v111_v57 = vpop.f32.mrf.mxu0 }
 0x10c   :  { %v114_v58 = vmax.f32 %v111_v57, 0.0 }
 0x10e   :  { %250 = vmatmul.msk.f32.vlgmr.msra.gmra.mxu1 %vm119_vm2, %v114_v58 }
 0x18b   :  { %v152_v62 = vpop.f32.mrf.mxu1 }
 0x18c   :  { %v251_v63 = vmul.f32 -1.442695, %v152_v62 }
 0x18e   :  { %261 = vpow2.f32 %v251_v63 }
 0x194   :  { %v262_v3 = vpop.eup %261 }
 0x195   :  { %v158_v4 = vadd.f32 1.0, %v262_v3 }
 0x197   :  { %263 = vrcp.f32 %v158_v4  ;;  %v170_v11 = vand.u32 2147483648, %v158_v4  ;;  %v168_v15 = vand.u32 2147483647, %v158_v4  ;;  %vm164_vm8 = vweird.f32 %v158_v4 }
 0x199   :  { %v171_v17 = vor.u32 1.1754944e-38, %v170_v11  ;;  %vm169_vm10 = vcmp.eq.f32.partialorder %v168_v15, 8.507059e+37 }
 0x19d   :  { %v264_v5 = vpop.eup %263 }
 0x19e   :  { %v160_v9 = vmul.f32 %v264_v5, %v158_v4  ;;  %vm165_vm7 = vweird.f32 %v264_v5 }
 0x19f   :  { %vm166_vm9 = vmor %vm164_vm8, %vm165_vm7 }
 0x1a0   :  { %v161_v10 = vsub.f32 1.0, %v160_v9 }
 0x1a2   :  { %v162_v14 = vmul.f32 %v264_v5, %v161_v10 }
 0x1a4   :  { %v163_v16 = vadd.f32 %v264_v5, %v162_v14 }
 0x1a6   :  { %v167_v18 = vsel %vm166_vm9, %v264_v5, %v163_v16 }
 0x1a7   :  { %v172_v19 = vsel %vm169_vm10, %v171_v17, %v167_v18 }
 0x1a8   :  { %v174_v20 = vperm.slane %v172_v19, 0  ;;  %v199_v22 = vperm.slane %v172_v19, 1 }
 0x1aa   :  { %191 = vperm.xlu1 %254, %v174_v20   ;;  %185 = vperm.xlu0 %253, %v174_v20  }
 0x1ab   :  { %179 = vperm.xlu2 %252, %v174_v20  }
 0x1b2   :  { %257 = vset.pattern.permute.xlu1 %v183_v61  ;;  %260 = vset.pattern.permute.xlu0 %v195_v21 }
 0x1b3   :  { %255 = vset.pattern.permute.xlu2 %v195_v21 }
 0x1ba   :  { %210 = vperm.xlu1 %257, %v199_v22  }
 0x1bb   :  { %197 = vperm.xlu2 %255, %v174_v20  }
 0x1c2   :  { %259 = vset.pattern.permute.xlu1 %v195_v21 }
 0x1c3   :  { %256 = vset.pattern.permute.xlu2 %v176_v59 }
 0x1ca   :  { %222 = vperm.xlu1 %259, %v199_v22  }
 0x1cb   :  { %204 = vperm.xlu2 %256, %v199_v22  }
 0x1d3   :  { %258 = vset.pattern.permute.xlu2 %v189_v60 }
 0x1db   :  { %216 = vperm.xlu2 %258, %v199_v22  }
 0x205   :  { %v180_v23 = vpop.permute.xlu2 %179 }
 0x206   :  { %v224_v24 = vmul.f32 %v180_v23, %v293_v1 }
 0x208   :  { %232 = vst.msk [vmem:[%s406_s3] sm:$0xff] %vm22_vm0, %v224_v24 }
 0x215   :  { %v198_v25 = vpop.permute.xlu2 %197 }
 0x216   :  { %v227_v26 = vmul.f32 %v198_v25, %v335_v13 }
 0x218   :  { %235 = vst.msk [vmem:[%s406_s3 + $0x18] sm:$0xff] %vm22_vm0, %v227_v26 }
 0x21c   :  { %v192_v27 = vpop.permute.xlu1 %191  ;;  %v186_v28 = vpop.permute.xlu0 %185 }
 0x21d   :  { %v226_v29 = vmul.f32 %v192_v27, %v298_v2  ;;  %v225_v30 = vmul.f32 %v186_v28, %v314_v7 }
 0x21f   :  { %234 = vst.msk [vmem:[%s406_s3 + $0x10] sm:$0xff] %vm22_vm0, %v226_v29 }
 0x220   :  { %233 = vst.msk [vmem:[%s406_s3 + $0x8] sm:$0xff] %vm22_vm0, %v225_v30 }
 0x225   :  { %v205_v1 = vpop.permute.xlu2 %204 }
 0x226   :  { %v228_v13 = vmul.f32 %v205_v1, %v288_v0 }
 0x228   :  { %236 = vst.msk [vmem:[%s406_s3 + $0x20] sm:$0xff] %vm22_vm0, %v228_v13 }
 0x22c   :  { %v211_v2 = vpop.permute.xlu1 %210 }
 0x22d   :  { %v229_v7 = vmul.f32 %v211_v2, %v309_v6 }
 0x22f   :  { %237 = vst.msk [vmem:[%s406_s3 + $0x28] sm:$0xff] %vm22_vm0, %v229_v7 }
 0x235   :  { %v217_v31 = vpop.permute.xlu2 %216 }
 0x236   :  { %v230_v32 = vmul.f32 %v217_v31, %v319_v8 }
 0x238   :  { %238 = vst.msk [vmem:[%s406_s3 + $0x30] sm:$0xff] %vm22_vm0, %v230_v32 }
 0x23c   :  { %v223_v0 = vpop.permute.xlu1 %222 }
 0x23d   :  { %v231_v33 = vmul.f32 %v223_v0, %v330_v12 }
 0x23f   :  { %239 = vst.msk [vmem:[%s406_s3 + $0x38] sm:$0xff] %vm22_vm0, %v231_v33 }

</bundles_post_ra>
